<compile_context>
chip_gen: v7x
topology: tpu7x:2x2x1
jax: 0.10.0
libtpu: 0.0.40
codegen_flags: <defaults>
</compile_context>

<pallas_src>
import functools

import jax
import jax.numpy as jnp
import numpy as np
from jax.experimental import pallas as pl
from jax.experimental.pallas import tpu as pltpu


def _round_up(v, m):
    return (v + m - 1) // m * m


# ---------------------------------------------------------------------------
# Kernel: fused conv3x3/stride2 (as 4 space-to-depth taps) + BN bias (+ ReLU)
# ---------------------------------------------------------------------------
def _conv_bn_kernel(x_ref, w_ref, b_ref, o_ref, *, m, wq, relu_in, relu_out):
    # x_ref: (1, R_pad, 4*Cin)   space-to-depth slab for one image (zero padded)
    # w_ref: (4, 4*Cin, Cout_pad) per-tap weights, BN scale already folded in
    # b_ref: (1, Cout_pad)        BN bias (f32)
    # o_ref: (1, m, Cout_pad)     flat output rows (ho * Wq + wo)
    x = x_ref[0]
    if relu_in:
        # applied once per input element (not per patch replica)
        x = jnp.maximum(x, 0)

    acc = jnp.zeros((m, o_ref.shape[-1]), jnp.float32)
    # 3x3 stride-2 conv == 2x2 stride-1 conv over the space-to-depth input.
    for dy in range(2):
        for dx in range(2):
            s = dy * wq + dx                      # static row offset of this tap
            tap = x[s:s + m, :]                   # (m, 4*Cin) contiguous slice
            acc += jnp.dot(tap, w_ref[dy * 2 + dx],
                           preferred_element_type=jnp.float32)

    acc = acc + b_ref[...]
    if relu_out:
        acc = jnp.maximum(acc, 0.0)
    o_ref[0] = acc.astype(o_ref.dtype)


def conv3x3_s2_bn(x_nhwc, w_oihw, scale, bias, *, relu_in=False, relu_out=False):
    """Fused Conv2d(3, stride=2, pad=1, bias=False) + folded BatchNorm (+ReLU)."""
    n, h, w, cin = x_nhwc.shape
    ho = (h - 1) // 2 + 1
    wo = (w - 1) // 2 + 1
    hp2 = _round_up(h + 2, 2)                     # padded height, even
    wp2 = _round_up(w + 2, 2)                     # padded width, even
    hq, wq = hp2 // 2, wp2 // 2                   # space-to-depth spatial dims
    k4 = 4 * cin
    cout = w_oihw.shape[0]
    cout_pad = _round_up(cout, 128)               # lane-dense output
    m = ho * wq                                   # flat output rows per image

    # ---- input: pad=1 (+ extra zero row/col to make dims even), then s2d ----
    xp = jnp.pad(x_nhwc, ((0, 0), (1, hp2 - h - 1), (1, wp2 - w - 1), (0, 0)))
    xs = xp.reshape(n, hq, 2, wq, 2, cin).transpose(0, 1, 3, 2, 4, 5)
    xs = xs.reshape(n, hq * wq, k4)
    xs = jnp.pad(xs, ((0, 0), (0, 8), (0, 0)))    # headroom for the (1,1) tap
    r_pad = hq * wq + 8

    # ---- weights: (Cout,Cin,3,3) -> 4 taps of (4*Cin, Cout_pad), BN folded ----
    w_hwio = jnp.transpose(w_oihw, (2, 3, 1, 0))                  # (3,3,Cin,Cout)
    w4 = jnp.pad(w_hwio, ((0, 1), (0, 1), (0, 0), (0, 0)))        # (4,4,Cin,Cout)
    w4 = w4.reshape(2, 2, 2, 2, cin, cout).transpose(0, 2, 1, 3, 4, 5)
    w4 = w4.reshape(4, k4, cout)                                  # [(dy,dx), (sy,sx,ci), co]
    w4 = w4 * scale[None, None, :]                                # fold BN scale
    w4 = jnp.pad(w4, ((0, 0), (0, 0), (0, cout_pad - cout))).astype(x_nhwc.dtype)
    b2 = jnp.pad(bias, (0, cout_pad - cout)).reshape(1, cout_pad).astype(jnp.float32)

    kern = functools.partial(_conv_bn_kernel, m=m, wq=wq,
                             relu_in=relu_in, relu_out=relu_out)

    itemsize = np.dtype(x_nhwc.dtype).itemsize
    cost = pl.CostEstimate(
        flops=2 * n * m * k4 * cout_pad * 4,
        transcendentals=0,
        bytes_accessed=(n * r_pad * k4 + 4 * k4 * cout_pad + n * m * cout_pad)
        * itemsize,
    )

    out = pl.pallas_call(
        kern,
        out_shape=jax.ShapeDtypeStruct((n, m, cout_pad), x_nhwc.dtype),
        grid_spec=pltpu.PrefetchScalarGridSpec(
            num_scalar_prefetch=0,
            grid=(n,),
            in_specs=[
                pl.BlockSpec((1, r_pad, k4), lambda i: (i, 0, 0)),       # slab
                pl.BlockSpec((4, k4, cout_pad), lambda i: (0, 0, 0)),    # weights
                pl.BlockSpec((1, cout_pad), lambda i: (0, 0)),           # bias
            ],
            out_specs=pl.BlockSpec((1, m, cout_pad), lambda i: (i, 0, 0)),
        ),
        compiler_params=pltpu.CompilerParams(dimension_semantics=("parallel",)),
        cost_estimate=cost,
    )(xs, w4, b2)

    # drop the junk column (wo == wq-1) and the Cout lane padding
    out = out.reshape(n, ho, wq, cout_pad)[:, :, :wo, :cout]
    return out


def fold_bn(gamma, beta, mean, var, eps=1e-5):
    # TODO(synk): BatchNorm implemented with inference (running-stats) semantics;
    # training-mode per-batch statistics are not computed here.
    scale = gamma / jnp.sqrt(var + eps)
    bias = beta - mean * scale
    return scale.astype(jnp.float32), bias.astype(jnp.float32)


def pre_two_stem(x_nchw, params):
    """Forward of PreTwoStem: returns (stem0(x), stem1(stem0(x))) in NCHW."""
    x = jnp.transpose(x_nchw, (0, 2, 3, 1))          # NCHW -> NHWC
    # stem0: Conv -> BN -> ReLU -> Conv -> BN
    h = conv3x3_s2_bn(x, params["w0a"], *params["bn0a"], relu_out=True)
    s0 = conv3x3_s2_bn(h, params["w0b"], *params["bn0b"])
    # stem1: ReLU -> Conv -> BN   (input ReLU fused into the kernel, applied once)
    s1 = conv3x3_s2_bn(s0, params["w1"], *params["bn1"], relu_in=True)
    to_nchw = lambda t: jnp.transpose(t, (0, 3, 1, 2))
    return to_nchw(s0), to_nchw(s1)


# ---------------------------------------------------------------------------
# Pure-JAX reference (lax.conv) for a correctness self-check.
# ---------------------------------------------------------------------------
def _ref_conv_bn(x_nhwc, w_oihw, scale, bias, relu_in=False, relu_out=False):
    xin = jnp.maximum(x_nhwc, 0.0) if relu_in else x_nhwc
    out = jax.lax.conv_general_dilated(
        xin, jnp.transpose(w_oihw, (2, 3, 1, 0)),
        window_strides=(2, 2), padding=((1, 1), (1, 1)),
        dimension_numbers=("NHWC", "HWIO", "NHWC"))
    out = out * scale + bias
    if relu_out:
        out = jnp.maximum(out, 0.0)
    return out


def _ref_pre_two_stem(x_nchw, params):
    x = jnp.transpose(x_nchw, (0, 2, 3, 1))
    h = _ref_conv_bn(x, params["w0a"], *params["bn0a"], relu_out=True)
    s0 = _ref_conv_bn(h, params["w0b"], *params["bn0b"])
    s1 = _ref_conv_bn(s0, params["w1"], *params["bn1"], relu_in=True)
    to_nchw = lambda t: jnp.transpose(t, (0, 3, 1, 2))
    return to_nchw(s0), to_nchw(s1)


def init_params(key, init_channels):
    c = init_channels
    c_half = c // 2
    ks = jax.random.split(key, 12)

    def bn(kg, kb, km, kv, ch):
        gamma = 1.0 + 0.1 * jax.random.normal(kg, (ch,), jnp.float32)
        beta = 0.1 * jax.random.normal(kb, (ch,), jnp.float32)
        mean = 0.1 * jax.random.normal(km, (ch,), jnp.float32)
        var = jax.random.uniform(kv, (ch,), jnp.float32, 0.5, 1.5)
        return fold_bn(gamma, beta, mean, var)

    params = {
        "w0a": 0.2 * jax.random.normal(ks[0], (c_half, 3, 3, 3), jnp.float32),
        "bn0a": bn(ks[1], ks[2], ks[3], ks[4], c_half),
        "w0b": 0.2 * jax.random.normal(ks[5], (c, c_half, 3, 3), jnp.float32),
        "bn0b": bn(ks[6], ks[7], ks[8], ks[9], c),
        "w1": 0.2 * jax.random.normal(ks[10], (c, c, 3, 3), jnp.float32),
        "bn1": bn(ks[11], ks[0], ks[5], ks[10], c),
    }
    return params


if __name__ == "__main__":
    key = jax.random.PRNGKey(0)
    k_x, k_p = jax.random.split(key)

    init_channels = 8            # self._C in the PyTorch module
    x = jax.random.normal(k_x, (2, 3, 16, 16), jnp.float32)   # NCHW, Cin=3
    params = init_params(k_p, init_channels)

    s0, s1 = jax.jit(pre_two_stem)(x, params)
    jax.block_until_ready((s0, s1))

    r0, r1 = _ref_pre_two_stem(x, params)
    assert s0.shape == (2, init_channels, 4, 4), s0.shape
    assert s1.shape == (2, init_channels, 2, 2), s1.shape
    np.testing.assert_allclose(np.asarray(s0), np.asarray(r0), rtol=2e-3, atol=2e-3)
    np.testing.assert_allclose(np.asarray(s1), np.asarray(r1), rtol=2e-3, atol=2e-3)

    print("KERNEL_OK")
</pallas_src>

<mosaic_0001>
module attributes {stable_mosaic.version = 11 : i64} {
  func.func @_conv_bn_kernel(%arg0: i32, %arg1: memref<1x89x12xf32, #tpu.memory_space<vmem>>, %arg2: memref<4x12x128xf32, #tpu.memory_space<vmem>>, %arg3: memref<1x128xf32, #tpu.memory_space<vmem>>, %arg4: memref<1x72x128xf32, #tpu.memory_space<vmem>>) attributes {dimension_semantics = [#tpu.dimension_semantics<parallel>], iteration_bounds = array<i64: 2>, scalar_prefetch = 0 : i64, scratch_operands = 0 : i64, tpu.core_type = #tpu.core_type<tc>, window_params = [{transform_indices = @transform_0, window_bounds = array<i64: 1, 89, 12>}, {pipeline_mode = #tpu.pipeline_mode<synchronous>, transform_indices = @transform_1, window_bounds = array<i64: 4, 12, 128>}, {pipeline_mode = #tpu.pipeline_mode<synchronous>, transform_indices = @transform_2, window_bounds = array<i64: 1, 128>}, {transform_indices = @transform_3, window_bounds = array<i64: 1, 72, 128>}]} {
    %c0 = arith.constant 0 : index
    %c0_0 = arith.constant 0 : index
    %c0_1 = arith.constant 0 : index
    %0 = vector.load %arg1[%c0, %c0_0, %c0_1] : memref<1x89x12xf32, #tpu.memory_space<vmem>>, vector<1x89x12xf32>
    %1 = vector.shape_cast %0 : vector<1x89x12xf32> to vector<89x12xf32>
    %cst = arith.constant 0.000000e+00 : f32
    %2 = vector.broadcast %cst : f32 to vector<72x128xf32>
    %3 = vector.extract_strided_slice %1 {offsets = [0, 0], sizes = [72, 12], strides = [1, 1]} : vector<89x12xf32> to vector<72x12xf32>
    %c0_2 = arith.constant 0 : index
    %c0_3 = arith.constant 0 : index
    %c0_4 = arith.constant 0 : index
    %4 = vector.load %arg2[%c0_2, %c0_3, %c0_4] : memref<4x12x128xf32, #tpu.memory_space<vmem>>, vector<1x12x128xf32>
    %5 = vector.shape_cast %4 : vector<1x12x128xf32> to vector<12x128xf32>
    %cst_5 = arith.constant dense<0.000000e+00> : vector<72x128xf32>
    %6 = tpu.matmul %3, %5, %cst_5 {dimension_numbers = #tpu.dot_dimension_numbers<[1], [0], [0], [1], [0, 0, 1, 1], [], []>} : vector<72x12xf32>, vector<12x128xf32>, vector<72x128xf32> -> vector<72x128xf32>
    %7 = arith.addf %2, %6 : vector<72x128xf32>
    %8 = vector.extract_strided_slice %1 {offsets = [1, 0], sizes = [72, 12], strides = [1, 1]} : vector<89x12xf32> to vector<72x12xf32>
    %c1 = arith.constant 1 : index
    %c0_6 = arith.constant 0 : index
    %c0_7 = arith.constant 0 : index
    %9 = vector.load %arg2[%c1, %c0_6, %c0_7] : memref<4x12x128xf32, #tpu.memory_space<vmem>>, vector<1x12x128xf32>
    %10 = vector.shape_cast %9 : vector<1x12x128xf32> to vector<12x128xf32>
    %cst_8 = arith.constant dense<0.000000e+00> : vector<72x128xf32>
    %11 = tpu.matmul %8, %10, %cst_8 {dimension_numbers = #tpu.dot_dimension_numbers<[1], [0], [0], [1], [0, 0, 1, 1], [], []>} : vector<72x12xf32>, vector<12x128xf32>, vector<72x128xf32> -> vector<72x128xf32>
    %12 = arith.addf %7, %11 : vector<72x128xf32>
    %13 = vector.extract_strided_slice %1 {offsets = [9, 0], sizes = [72, 12], strides = [1, 1]} : vector<89x12xf32> to vector<72x12xf32>
    %c2 = arith.constant 2 : index
    %c0_9 = arith.constant 0 : index
    %c0_10 = arith.constant 0 : index
    %14 = vector.load %arg2[%c2, %c0_9, %c0_10] : memref<4x12x128xf32, #tpu.memory_space<vmem>>, vector<1x12x128xf32>
    %15 = vector.shape_cast %14 : vector<1x12x128xf32> to vector<12x128xf32>
    %cst_11 = arith.constant dense<0.000000e+00> : vector<72x128xf32>
    %16 = tpu.matmul %13, %15, %cst_11 {dimension_numbers = #tpu.dot_dimension_numbers<[1], [0], [0], [1], [0, 0, 1, 1], [], []>} : vector<72x12xf32>, vector<12x128xf32>, vector<72x128xf32> -> vector<72x128xf32>
    %17 = arith.addf %12, %16 : vector<72x128xf32>
    %18 = vector.extract_strided_slice %1 {offsets = [10, 0], sizes = [72, 12], strides = [1, 1]} : vector<89x12xf32> to vector<72x12xf32>
    %c3 = arith.constant 3 : index
    %c0_12 = arith.constant 0 : index
    %c0_13 = arith.constant 0 : index
    %19 = vector.load %arg2[%c3, %c0_12, %c0_13] : memref<4x12x128xf32, #tpu.memory_space<vmem>>, vector<1x12x128xf32>
    %20 = vector.shape_cast %19 : vector<1x12x128xf32> to vector<12x128xf32>
    %cst_14 = arith.constant dense<0.000000e+00> : vector<72x128xf32>
    %21 = tpu.matmul %18, %20, %cst_14 {dimension_numbers = #tpu.dot_dimension_numbers<[1], [0], [0], [1], [0, 0, 1, 1], [], []>} : vector<72x12xf32>, vector<12x128xf32>, vector<72x128xf32> -> vector<72x128xf32>
    %22 = arith.addf %17, %21 : vector<72x128xf32>
    %c0_15 = arith.constant 0 : index
    %c0_16 = arith.constant 0 : index
    %23 = vector.load %arg3[%c0_15, %c0_16] : memref<1x128xf32, #tpu.memory_space<vmem>>, vector<1x128xf32>
    %24 = vector.broadcast %23 : vector<1x128xf32> to vector<72x128xf32>
    %25 = arith.addf %22, %24 : vector<72x128xf32>
    %cst_17 = arith.constant 0.000000e+00 : f32
    %26 = vector.broadcast %cst_17 : f32 to vector<72x128xf32>
    %27 = arith.maximumf %25, %26 : vector<72x128xf32>
    %c0_18 = arith.constant 0 : index
    %c0_19 = arith.constant 0 : index
    %c0_20 = arith.constant 0 : index
    %28 = vector.load %arg4[%c0_18, %c0_19, %c0_20] : memref<1x72x128xf32, #tpu.memory_space<vmem>>, vector<1x72x128xf32>
    %29 = vector.shape_cast %28 : vector<1x72x128xf32> to vector<72x128xf32>
    %30 = vector.shape_cast %27 : vector<72x128xf32> to vector<1x72x128xf32>
    tpu.vector_store %arg4[%c0_18, %c0_19, %c0_20], %30 {strides = array<i32>} : memref<1x72x128xf32, #tpu.memory_space<vmem>>, vector<1x72x128xf32>,
    return
  }
  func.func @transform_0(%arg0: i32) -> (i32, i32, i32) {
    %c0_i32 = arith.constant 0 : i32
    %c0_i32_0 = arith.constant 0 : i32
    %c0_i32_1 = arith.constant 0 : i32
    return %arg0, %c0_i32, %c0_i32_0 : i32, i32, i32
  }
  func.func @transform_1(%arg0: i32) -> (i32, i32, i32) {
    %c0_i32 = arith.constant 0 : i32
    %c0_i32_0 = arith.constant 0 : i32
    %c0_i32_1 = arith.constant 0 : i32
    %c0_i32_2 = arith.constant 0 : i32
    return %c0_i32, %c0_i32_0, %c0_i32_1 : i32, i32, i32
  }
  func.func @transform_2(%arg0: i32) -> (i32, i32) {
    %c0_i32 = arith.constant 0 : i32
    %c0_i32_0 = arith.constant 0 : i32
    %c0_i32_1 = arith.constant 0 : i32
    return %c0_i32, %c0_i32_0 : i32, i32
  }
  func.func @transform_3(%arg0: i32) -> (i32, i32, i32) {
    %c0_i32 = arith.constant 0 : i32
    %c0_i32_0 = arith.constant 0 : i32
    %c0_i32_1 = arith.constant 0 : i32
    return %arg0, %c0_i32, %c0_i32_0 : i32, i32, i32
  }
}

module attributes {stable_mosaic.version = 11 : i64} {
  func.func @_conv_bn_kernel(%arg0: i32, %arg1: memref<1x33x16xf32, #tpu.memory_space<vmem>>, %arg2: memref<4x16x128xf32, #tpu.memory_space<vmem>>, %arg3: memref<1x128xf32, #tpu.memory_space<vmem>>, %arg4: memref<1x20x128xf32, #tpu.memory_space<vmem>>) attributes {dimension_semantics = [#tpu.dimension_semantics<parallel>], iteration_bounds = array<i64: 2>, scalar_prefetch = 0 : i64, scratch_operands = 0 : i64, tpu.core_type = #tpu.core_type<tc>, window_params = [{transform_indices = @transform_0, window_bounds = array<i64: 1, 33, 16>}, {pipeline_mode = #tpu.pipeline_mode<synchronous>, transform_indices = @transform_1, window_bounds = array<i64: 4, 16, 128>}, {pipeline_mode = #tpu.pipeline_mode<synchronous>, transform_indices = @transform_2, window_bounds = array<i64: 1, 128>}, {transform_indices = @transform_3, window_bounds = array<i64: 1, 20, 128>}]} {
    %c0 = arith.constant 0 : index
    %c0_0 = arith.constant 0 : index
    %c0_1 = arith.constant 0 : index
    %0 = vector.load %arg1[%c0, %c0_0, %c0_1] : memref<1x33x16xf32, #tpu.memory_space<vmem>>, vector<1x33x16xf32>
    %1 = vector.shape_cast %0 : vector<1x33x16xf32> to vector<33x16xf32>
    %cst = arith.constant 0.000000e+00 : f32
    %2 = vector.broadcast %cst : f32 to vector<20x128xf32>
    %3 = vector.extract_strided_slice %1 {offsets = [0, 0], sizes = [20, 16], strides = [1, 1]} : vector<33x16xf32> to vector<20x16xf32>
    %c0_2 = arith.constant 0 : index
    %c0_3 = arith.constant 0 : index
    %c0_4 = arith.constant 0 : index
    %4 = vector.load %arg2[%c0_2, %c0_3, %c0_4] : memref<4x16x128xf32, #tpu.memory_space<vmem>>, vector<1x16x128xf32>
    %5 = vector.shape_cast %4 : vector<1x16x128xf32> to vector<16x128xf32>
    %cst_5 = arith.constant dense<0.000000e+00> : vector<20x128xf32>
    %6 = tpu.matmul %3, %5, %cst_5 {dimension_numbers = #tpu.dot_dimension_numbers<[1], [0], [0], [1], [0, 0, 1, 1], [], []>} : vector<20x16xf32>, vector<16x128xf32>, vector<20x128xf32> -> vector<20x128xf32>
    %7 = arith.addf %2, %6 : vector<20x128xf32>
    %8 = vector.extract_strided_slice %1 {offsets = [1, 0], sizes = [20, 16], strides = [1, 1]} : vector<33x16xf32> to vector<20x16xf32>
    %c1 = arith.constant 1 : index
    %c0_6 = arith.constant 0 : index
    %c0_7 = arith.constant 0 : index
    %9 = vector.load %arg2[%c1, %c0_6, %c0_7] : memref<4x16x128xf32, #tpu.memory_space<vmem>>, vector<1x16x128xf32>
    %10 = vector.shape_cast %9 : vector<1x16x128xf32> to vector<16x128xf32>
    %cst_8 = arith.constant dense<0.000000e+00> : vector<20x128xf32>
    %11 = tpu.matmul %8, %10, %cst_8 {dimension_numbers = #tpu.dot_dimension_numbers<[1], [0], [0], [1], [0, 0, 1, 1], [], []>} : vector<20x16xf32>, vector<16x128xf32>, vector<20x128xf32> -> vector<20x128xf32>
    %12 = arith.addf %7, %11 : vector<20x128xf32>
    %13 = vector.extract_strided_slice %1 {offsets = [5, 0], sizes = [20, 16], strides = [1, 1]} : vector<33x16xf32> to vector<20x16xf32>
    %c2 = arith.constant 2 : index
    %c0_9 = arith.constant 0 : index
    %c0_10 = arith.constant 0 : index
    %14 = vector.load %arg2[%c2, %c0_9, %c0_10] : memref<4x16x128xf32, #tpu.memory_space<vmem>>, vector<1x16x128xf32>
    %15 = vector.shape_cast %14 : vector<1x16x128xf32> to vector<16x128xf32>
    %cst_11 = arith.constant dense<0.000000e+00> : vector<20x128xf32>
    %16 = tpu.matmul %13, %15, %cst_11 {dimension_numbers = #tpu.dot_dimension_numbers<[1], [0], [0], [1], [0, 0, 1, 1], [], []>} : vector<20x16xf32>, vector<16x128xf32>, vector<20x128xf32> -> vector<20x128xf32>
    %17 = arith.addf %12, %16 : vector<20x128xf32>
    %18 = vector.extract_strided_slice %1 {offsets = [6, 0], sizes = [20, 16], strides = [1, 1]} : vector<33x16xf32> to vector<20x16xf32>
    %c3 = arith.constant 3 : index
    %c0_12 = arith.constant 0 : index
    %c0_13 = arith.constant 0 : index
    %19 = vector.load %arg2[%c3, %c0_12, %c0_13] : memref<4x16x128xf32, #tpu.memory_space<vmem>>, vector<1x16x128xf32>
    %20 = vector.shape_cast %19 : vector<1x16x128xf32> to vector<16x128xf32>
    %cst_14 = arith.constant dense<0.000000e+00> : vector<20x128xf32>
    %21 = tpu.matmul %18, %20, %cst_14 {dimension_numbers = #tpu.dot_dimension_numbers<[1], [0], [0], [1], [0, 0, 1, 1], [], []>} : vector<20x16xf32>, vector<16x128xf32>, vector<20x128xf32> -> vector<20x128xf32>
    %22 = arith.addf %17, %21 : vector<20x128xf32>
    %c0_15 = arith.constant 0 : index
    %c0_16 = arith.constant 0 : index
    %23 = vector.load %arg3[%c0_15, %c0_16] : memref<1x128xf32, #tpu.memory_space<vmem>>, vector<1x128xf32>
    %24 = vector.broadcast %23 : vector<1x128xf32> to vector<20x128xf32>
    %25 = arith.addf %22, %24 : vector<20x128xf32>
    %c0_17 = arith.constant 0 : index
    %c0_18 = arith.constant 0 : index
    %c0_19 = arith.constant 0 : index
    %26 = vector.load %arg4[%c0_17, %c0_18, %c0_19] : memref<1x20x128xf32, #tpu.memory_space<vmem>>, vector<1x20x128xf32>
    %27 = vector.shape_cast %26 : vector<1x20x128xf32> to vector<20x128xf32>
    %28 = vector.shape_cast %25 : vector<20x128xf32> to vector<1x20x128xf32>
    tpu.vector_store %arg4[%c0_17, %c0_18, %c0_19], %28 {strides = array<i32>} : memref<1x20x128xf32, #tpu.memory_space<vmem>>, vector<1x20x128xf32>,
    return
  }
  func.func @transform_0(%arg0: i32) -> (i32, i32, i32) {
    %c0_i32 = arith.constant 0 : i32
    %c0_i32_0 = arith.constant 0 : i32
    %c0_i32_1 = arith.constant 0 : i32
    return %arg0, %c0_i32, %c0_i32_0 : i32, i32, i32
  }
  func.func @transform_1(%arg0: i32) -> (i32, i32, i32) {
    %c0_i32 = arith.constant 0 : i32
    %c0_i32_0 = arith.constant 0 : i32
    %c0_i32_1 = arith.constant 0 : i32
    %c0_i32_2 = arith.constant 0 : i32
    return %c0_i32, %c0_i32_0, %c0_i32_1 : i32, i32, i32
  }
  func.func @transform_2(%arg0: i32) -> (i32, i32) {
    %c0_i32 = arith.constant 0 : i32
    %c0_i32_0 = arith.constant 0 : i32
    %c0_i32_1 = arith.constant 0 : i32
    return %c0_i32, %c0_i32_0 : i32, i32
  }
  func.func @transform_3(%arg0: i32) -> (i32, i32, i32) {
    %c0_i32 = arith.constant 0 : i32
    %c0_i32_0 = arith.constant 0 : i32
    %c0_i32_1 = arith.constant 0 : i32
    return %arg0, %c0_i32, %c0_i32_0 : i32, i32, i32
  }
}

module attributes {stable_mosaic.version = 11 : i64} {
  func.func @_conv_bn_kernel(%arg0: i32, %arg1: memref<1x17x32xf32, #tpu.memory_space<vmem>>, %arg2: memref<4x32x128xf32, #tpu.memory_space<vmem>>, %arg3: memref<1x128xf32, #tpu.memory_space<vmem>>, %arg4: memref<1x6x128xf32, #tpu.memory_space<vmem>>) attributes {dimension_semantics = [#tpu.dimension_semantics<parallel>], iteration_bounds = array<i64: 2>, scalar_prefetch = 0 : i64, scratch_operands = 0 : i64, tpu.core_type = #tpu.core_type<tc>, window_params = [{transform_indices = @transform_0, window_bounds = array<i64: 1, 17, 32>}, {pipeline_mode = #tpu.pipeline_mode<synchronous>, transform_indices = @transform_1, window_bounds = array<i64: 4, 32, 128>}, {pipeline_mode = #tpu.pipeline_mode<synchronous>, transform_indices = @transform_2, window_bounds = array<i64: 1, 128>}, {transform_indices = @transform_3, window_bounds = array<i64: 1, 6, 128>}]} {
    %c0 = arith.constant 0 : index
    %c0_0 = arith.constant 0 : index
    %c0_1 = arith.constant 0 : index
    %0 = vector.load %arg1[%c0, %c0_0, %c0_1] : memref<1x17x32xf32, #tpu.memory_space<vmem>>, vector<1x17x32xf32>
    %1 = vector.shape_cast %0 : vector<1x17x32xf32> to vector<17x32xf32>
    %cst = arith.constant 0.000000e+00 : f32
    %2 = vector.broadcast %cst : f32 to vector<17x32xf32>
    %3 = arith.maximumf %1, %2 : vector<17x32xf32>
    %cst_2 = arith.constant 0.000000e+00 : f32
    %4 = vector.broadcast %cst_2 : f32 to vector<6x128xf32>
    %5 = vector.extract_strided_slice %3 {offsets = [0, 0], sizes = [6, 32], strides = [1, 1]} : vector<17x32xf32> to vector<6x32xf32>
    %c0_3 = arith.constant 0 : index
    %c0_4 = arith.constant 0 : index
    %c0_5 = arith.constant 0 : index
    %6 = vector.load %arg2[%c0_3, %c0_4, %c0_5] : memref<4x32x128xf32, #tpu.memory_space<vmem>>, vector<1x32x128xf32>
    %7 = vector.shape_cast %6 : vector<1x32x128xf32> to vector<32x128xf32>
    %cst_6 = arith.constant dense<0.000000e+00> : vector<6x128xf32>
    %8 = tpu.matmul %5, %7, %cst_6 {dimension_numbers = #tpu.dot_dimension_numbers<[1], [0], [0], [1], [0, 0, 1, 1], [], []>} : vector<6x32xf32>, vector<32x128xf32>, vector<6x128xf32> -> vector<6x128xf32>
    %9 = arith.addf %4, %8 : vector<6x128xf32>
    %10 = vector.extract_strided_slice %3 {offsets = [1, 0], sizes = [6, 32], strides = [1, 1]} : vector<17x32xf32> to vector<6x32xf32>
    %c1 = arith.constant 1 : index
    %c0_7 = arith.constant 0 : index
    %c0_8 = arith.constant 0 : index
    %11 = vector.load %arg2[%c1, %c0_7, %c0_8] : memref<4x32x128xf32, #tpu.memory_space<vmem>>, vector<1x32x128xf32>
    %12 = vector.shape_cast %11 : vector<1x32x128xf32> to vector<32x128xf32>
    %cst_9 = arith.constant dense<0.000000e+00> : vector<6x128xf32>
    %13 = tpu.matmul %10, %12, %cst_9 {dimension_numbers = #tpu.dot_dimension_numbers<[1], [0], [0], [1], [0, 0, 1, 1], [], []>} : vector<6x32xf32>, vector<32x128xf32>, vector<6x128xf32> -> vector<6x128xf32>
    %14 = arith.addf %9, %13 : vector<6x128xf32>
    %15 = vector.extract_strided_slice %3 {offsets = [3, 0], sizes = [6, 32], strides = [1, 1]} : vector<17x32xf32> to vector<6x32xf32>
    %c2 = arith.constant 2 : index
    %c0_10 = arith.constant 0 : index
    %c0_11 = arith.constant 0 : index
    %16 = vector.load %arg2[%c2, %c0_10, %c0_11] : memref<4x32x128xf32, #tpu.memory_space<vmem>>, vector<1x32x128xf32>
    %17 = vector.shape_cast %16 : vector<1x32x128xf32> to vector<32x128xf32>
    %cst_12 = arith.constant dense<0.000000e+00> : vector<6x128xf32>
    %18 = tpu.matmul %15, %17, %cst_12 {dimension_numbers = #tpu.dot_dimension_numbers<[1], [0], [0], [1], [0, 0, 1, 1], [], []>} : vector<6x32xf32>, vector<32x128xf32>, vector<6x128xf32> -> vector<6x128xf32>
    %19 = arith.addf %14, %18 : vector<6x128xf32>
    %20 = vector.extract_strided_slice %3 {offsets = [4, 0], sizes = [6, 32], strides = [1, 1]} : vector<17x32xf32> to vector<6x32xf32>
    %c3 = arith.constant 3 : index
    %c0_13 = arith.constant 0 : index
    %c0_14 = arith.constant 0 : index
    %21 = vector.load %arg2[%c3, %c0_13, %c0_14] : memref<4x32x128xf32, #tpu.memory_space<vmem>>, vector<1x32x128xf32>
    %22 = vector.shape_cast %21 : vector<1x32x128xf32> to vector<32x128xf32>
    %cst_15 = arith.constant dense<0.000000e+00> : vector<6x128xf32>
    %23 = tpu.matmul %20, %22, %cst_15 {dimension_numbers = #tpu.dot_dimension_numbers<[1], [0], [0], [1], [0, 0, 1, 1], [], []>} : vector<6x32xf32>, vector<32x128xf32>, vector<6x128xf32> -> vector<6x128xf32>
    %24 = arith.addf %19, %23 : vector<6x128xf32>
    %c0_16 = arith.constant 0 : index
    %c0_17 = arith.constant 0 : index
    %25 = vector.load %arg3[%c0_16, %c0_17] : memref<1x128xf32, #tpu.memory_space<vmem>>, vector<1x128xf32>
    %26 = vector.broadcast %25 : vector<1x128xf32> to vector<6x128xf32>
    %27 = arith.addf %24, %26 : vector<6x128xf32>
    %c0_18 = arith.constant 0 : index
    %c0_19 = arith.constant 0 : index
    %c0_20 = arith.constant 0 : index
    %28 = vector.load %arg4[%c0_18, %c0_19, %c0_20] : memref<1x6x128xf32, #tpu.memory_space<vmem>>, vector<1x6x128xf32>
    %29 = vector.shape_cast %28 : vector<1x6x128xf32> to vector<6x128xf32>
    %30 = vector.shape_cast %27 : vector<6x128xf32> to vector<1x6x128xf32>
    tpu.vector_store %arg4[%c0_18, %c0_19, %c0_20], %30 {strides = array<i32>} : memref<1x6x128xf32, #tpu.memory_space<vmem>>, vector<1x6x128xf32>,
    return
  }
  func.func @transform_0(%arg0: i32) -> (i32, i32, i32) {
    %c0_i32 = arith.constant 0 : i32
    %c0_i32_0 = arith.constant 0 : i32
    %c0_i32_1 = arith.constant 0 : i32
    return %arg0, %c0_i32, %c0_i32_0 : i32, i32, i32
  }
  func.func @transform_1(%arg0: i32) -> (i32, i32, i32) {
    %c0_i32 = arith.constant 0 : i32
    %c0_i32_0 = arith.constant 0 : i32
    %c0_i32_1 = arith.constant 0 : i32
    %c0_i32_2 = arith.constant 0 : i32
    return %c0_i32, %c0_i32_0, %c0_i32_1 : i32, i32, i32
  }
  func.func @transform_2(%arg0: i32) -> (i32, i32) {
    %c0_i32 = arith.constant 0 : i32
    %c0_i32_0 = arith.constant 0 : i32
    %c0_i32_1 = arith.constant 0 : i32
    return %c0_i32, %c0_i32_0 : i32, i32
  }
  func.func @transform_3(%arg0: i32) -> (i32, i32, i32) {
    %c0_i32 = arith.constant 0 : i32
    %c0_i32_0 = arith.constant 0 : i32
    %c0_i32_1 = arith.constant 0 : i32
    return %arg0, %c0_i32, %c0_i32_0 : i32, i32, i32
  }
}

</mosaic_0001>

<bundles_post_ra>
// kernel: pre_two_stem.4
= control target key start
LH: loop header
LB: loop body
LE: loop exit
PB: predicated region body
PF: predicated region fallthrough
CT: control target
= control target key end

     0   :  { %s787_s12 = smov 0   ;;  %s883_s0 = inlined_call_operand.vmem [shape: f32[2,33,16], index: 0, kind: input, shape index: {}]   ;;  %s884_s1 = inlined_call_operand.vmem [shape: f32[4,16,128], index: 1, kind: input, shape index: {}]   ;;  %s885_s2 = inlined_call_operand.vmem [shape: f32[1,128], index: 2, kind: input, shape index: {}]   ;;  %s886_s3 = inlined_call_operand.vmem [shape: f32[2,20,128], index: 3, kind: output, shape index: {}]  }
   0x1 LB: > { %s631_s13 = sadd.s32 4294967295, %s762_s12   ;;  %p635_p0 = scmp.ge.s32.totalorder %s762_s12, 1  ;;  %s762_s12 = sphi %s787_s12, %s13_s12  }
   0x2   : > { %p137_p1 = scmp.lt.s32.totalorder %s762_s12, 3 }
   0x4   : > { %p138_p2 = pnand %p635_p0, %p137_p1 }
   0x5   : > { %v638_v0 = vld [vmem:[%s884_s1 + $0x10] sm:$0xff] (!%p138_p2)  ;;  %v639_v1 = vld [vmem:[%s884_s1 + $0x18] sm:$0xff] (!%p138_p2)  ;;  %v175_v2 = vld [vmem:[%s884_s1] sm:$0xff] (!%p138_p2)  ;;  %v764_v3 = vmov (!%p138_p2), 0.0|0.0   ;;  %p161_p3 = scmp.lt.s32.totalorder (!%p138_p2), %s631_s13, 1  ;;  %vm765_vm0 = vmmov (!%p138_p2), 0  }
   0x6   : > { %141 = sbr.rel (%p138_p2) target bundleno = 260 (0x104), region = 32  ;;  %731 = vmatprep.subr.bf16.mxu0 (!%p138_p2), %v764_v3  ;;  %v732_v4 = vpack.c.bf16 (!%p138_p2), %v639_v1, %v638_v0  ;;  %734 = vmatprep.subr.bf16.mxu1 (!%p138_p2), %v764_v3  ;;  %v176_v5 = vld [vmem:[%s884_s1 + $0x8] sm:$0xff] (!%p138_p2)  ;;  %v766_v7 = vmov (!%p138_p2), 0.0   ;;  %v651_v8 = vld [vmem:[%s884_s1 + $0x30] sm:$0xff] (!%p138_p2)  ;;  %v652_v9 = vld [vmem:[%s884_s1 + $0x38] sm:$0xff] (!%p138_p2)  ;;  %vm189_vm1 = vcmask (!%p138_p2), 130048  }
   0x7   : > { %v735_v6 = vpack.c.bf16 (!%p138_p2), %v176_v5, %v175_v2  ;;  %683 = vmatprep.mubr.msk.f32.mxu0 (!%p138_p2), %vm765_vm0, %v766_v7  ;;  %696 = vmatprep.mubr.msk.f32.mxu1 (!%p138_p2), %vm765_vm0, %v766_v7  ;;  %v646_v10 = vld [vmem:[%s884_s1 + $0x20] sm:$0xff] (!%p138_p2)  ;;  %v647_v11 = vld [vmem:[%s884_s1 + $0x28] sm:$0xff] (!%p138_p2)  ;;  %v741_v12 = vpack.c.bf16 (!%p138_p2), %v652_v9, %v651_v8  ;;  %vm183_vm2 = vcmask (!%p138_p2), 1046528   ;;  %vm466_vm3 = vcmask (!%p138_p2), 1041408  }
   0x8   : > { %733 = vmatpush3.bf16.msra.mxu0 (!%p138_p2), %v732_v4  ;;  %v738_v18 = vpack.c.bf16 (!%p138_p2), %v647_v11, %v646_v10  ;;  %vm366_vm4 = vcmask (!%p138_p2), 1042432   ;;  %v656_v57 = vld [vmem:[%s885_s2] ss:$0 sm:$0xff] (!%p138_p2) }
   0x9   : > { %736 = vmatpush3.bf16.msra.mxu1 (!%p138_p2), %v735_v6  ;;  %737 = vmatprep.subr.bf16.mxu0 (!%p138_p2), %v764_v3 }
   0xa   : > { %740 = vmatprep.subr.bf16.mxu1 (!%p138_p2), %v764_v3 }
   0xd   : > { %s888_s13 = smov (!%p161_p3, %s631_s13), 1 }
   0xe   : > { %s743_s26 = smul.u32 40, %s888_s13 }
   0xf   : > { %s744_s7 = smul.u32 24, %s888_s13 }
  0x10   : > { %s829_s6 = scalar_lea.vmem %s883_s0, %s743_s26 }
  0x11   : > { %v171_v13 = vld [vmem:[%s829_s6] sm:$0xff]  ;;  %v172_v14 = vld [vmem:[%s829_s6 + $0x8] sm:$0xff]  ;;  %v173_v15 = vld [vmem:[%s829_s6 + $0x10] sm:$0xff]  ;;  %s170_s14 = scalar_lea.vmem %s886_s3, %s744_s7 }
  0x12   : > { %v184_v16 = vrot.slane %v171_v13, 1  ;;  %v185_v17 = vrot.slane %v172_v14, 1  ;;  %697 = vmatmul.mubr.msk.f32.vlgmr.msra.gmra.mrb[0].mxu1 %vm189_vm1, %v171_v13  ;;  %v187_v19 = vrot.slane %v173_v15, 1  ;;  %v467_v22 = vrot.slane %v171_v13, 6  ;;  %v174_v28 = vld [vmem:[%s829_s6 + $0x18] sm:$0xff] }
  0x13   : > { %742 = vmatpush3.bf16.msra.mxu1 %v741_v12  ;;  %699 = vmatprep.mubr.msk.f32.mxu1 %vm765_vm0, %v766_v7  ;;  %v468_v23 = vrot.slane %v172_v14, 6  ;;  %v367_v24 = vrot.slane %v171_v13, 5  ;;  %v368_v25 = vrot.slane %v172_v14, 5  ;;  %v470_v27 = vrot.slane %v173_v15, 6 }
  0x14   : > { %v186_v20 = vsel %vm183_vm2, %v184_v16, %v185_v17  ;;  %v188_v21 = vsel %vm183_vm2, %v185_v17, %v187_v19  ;;  %v370_v30 = vrot.slane %v173_v15, 5  ;;  %v472_v32 = vrot.slane %v174_v28, 6 }
  0x15   : > { %684 = vmatmul.mubr.msk.f32.vlgmr.msra.gmra.mrb[0].mxu0 %vm189_vm1, %v186_v20  ;;  %v469_v26 = vsel %vm466_vm3, %v467_v22, %v468_v23  ;;  %v369_v29 = vsel %vm366_vm4, %v367_v24, %v368_v25  ;;  %v471_v31 = vsel %vm466_vm3, %v468_v23, %v470_v27  ;;  %v372_v34 = vrot.slane %v174_v28, 5 }
  0x16   : > { %739 = vmatpush3.bf16.msra.mxu0 %v738_v18  ;;  %686 = vmatprep.mubr.msk.f32.mxu0 %vm765_vm0, %v766_v7  ;;  %v371_v33 = vsel %vm366_vm4, %v368_v25, %v370_v30  ;;  %v473_v35 = vsel %vm466_vm3, %v470_v27, %v472_v32 }
  0x17   : > { %700 = vmatmul.mubr.msk.f32.gmra.mrb[2].mxu1 %vm189_vm1, %v172_v14  ;;  %v373_v36 = vsel %vm366_vm4, %v370_v30, %v372_v34 }
  0x18   : > { %702 = vmatprep.mubr.msk.f32.mxu1 %vm765_vm0, %v766_v7 }
  0x19   : > { %687 = vmatmul.mubr.msk.f32.gmra.mrb[2].mxu0 %vm189_vm1, %v188_v21 }
  0x1a   : > { %689 = vmatprep.mubr.msk.f32.mxu0 %vm765_vm0, %v766_v7 }
  0x1b   : > { %703 = vmatmul.mubr.msk.f32.gmra.mrb[4].mxu1 %vm189_vm1, %v173_v15 }
  0x1c   : > { %722 = vmatprep.mubr.msk.f32.mxu1 %vm765_vm0, %v766_v7 }
  0x1d   : > { %690 = vmatmul.mubr.msk.f32.gmra.mrb[4].mxu0 %vm189_vm1, %v187_v19 }
  0x1e   : > { %709 = vmatprep.mubr.msk.f32.mxu0 %vm765_vm0, %v766_v7 }
  0x1f   : > { %723 = vmatmul.mubr.msk.f32.vlgmr.msra.gmra.mrb[6].mxu1 %vm189_vm1, %v469_v26 }
  0x20   : > { %725 = vmatprep.mubr.msk.f32.mxu1 %vm765_vm0, %v766_v7 }
  0x21   : > { %710 = vmatmul.mubr.msk.f32.vlgmr.msra.gmra.mrb[6].mxu0 %vm189_vm1, %v369_v29 }
  0x22   : > { %712 = vmatprep.mubr.msk.f32.mxu0 %vm765_vm0, %v766_v7 }
  0x23   : > { %726 = vmatmul.mubr.msk.f32.gmra.mrb[8].mxu1 %vm189_vm1, %v471_v31 }
  0x24   : > { %728 = vmatprep.mubr.msk.f32.mxu1 %vm765_vm0, %v766_v7 }
  0x25   : > { %713 = vmatmul.mubr.msk.f32.gmra.mrb[8].mxu0 %vm189_vm1, %v371_v33 }
  0x26   : > { %715 = vmatprep.mubr.msk.f32.mxu0 %vm765_vm0, %v766_v7 }
  0x27   : > { %729 = vmatmul.mubr.msk.f32.gmra.mrb[10].mxu1 %vm189_vm1, %v473_v35 }
  0x29   : > { %716 = vmatmul.mubr.msk.f32.gmra.mrb[10].mxu0 %vm189_vm1, %v373_v36 }
  0xe5   : > { %v348_v37 = vpop.f32.mrb[0].mxu1 }
  0xe6   : > { %v698_v38 = vpop.f32.mrb[1].mxu1 }
  0xe8   : > { %v262_v39 = vpop.f32.mrb[0].mxu0 }
  0xe9   : > { %v349_v40 = vadd.f32 %v348_v37, %v262_v39  ;;  %v685_v41 = vpop.f32.mrb[1].mxu0 }
  0xea   : > { %v353_v42 = vpop.f32.mrb[2].mxu1 }
  0xeb   : > { %v701_v43 = vpop.f32.mrb[3].mxu1 }
  0xec   : > { %v267_v44 = vpop.f32.mrb[2].mxu0 }
  0xed   : > { %v354_v45 = vadd.f32 %v353_v42, %v267_v44  ;;  %v688_v46 = vpop.f32.mrb[3].mxu0 }
  0xee   : > { %v358_v47 = vpop.f32.mrb[4].mxu1 }
  0xef   : > { %v704_v48 = vpop.f32.mrb[5].mxu1 }
  0xf0   : > { %v272_v49 = vpop.f32.mrb[4].mxu0 }
  0xf1   : > { %v359_v50 = vadd.f32 %v358_v47, %v272_v49  ;;  %v691_v51 = vpop.f32.mrb[5].mxu0 }
  0xf2   : > { %v546_v52 = vpop.f32.mrb[6].mxu1 }
  0xf3   : > { %v724_v53 = vpop.f32.mrb[7].mxu1 }
  0xf4   : > { %v446_v54 = vpop.f32.mrb[6].mxu0 }
  0xf5   : > { %v460_v55 = vadd.f32 %v446_v54, %v349_v40  ;;  %v711_v56 = vpop.f32.mrb[7].mxu0 }
  0xf6   : > { %v551_v58 = vpop.f32.mrb[8].mxu1 }
  0xf7   : > { %v560_v59 = vadd.f32 %v546_v52, %v460_v55  ;;  %v727_v60 = vpop.f32.mrb[9].mxu1 }
  0xf8   : > { %v451_v61 = vpop.f32.mrb[8].mxu0 }
  0xf9   : > { %v570_v62 = vadd.f32 %v656_v57, %v560_v59  ;;  %v461_v63 = vadd.f32 %v451_v61, %v354_v45  ;;  %v714_v0 = vpop.f32.mrb[9].mxu0 }
  0xfa   : > { %v556_v1 = vpop.f32.mrb[10].mxu1 }
  0xfb   : > { %573 = vst [vmem:[%s170_s14] sm:$0xff] %v570_v62  ;;  %v561_v2 = vadd.f32 %v551_v58, %v461_v63  ;;  %v730_v3 = vpop.f32.mrb[11].mxu1 }
  0xfc   : > { %v456_v4 = vpop.f32.mrb[10].mxu0 }
  0xfd   : > { %v571_v5 = vadd.f32 %v656_v57, %v561_v2  ;;  %v462_v6 = vadd.f32 %v456_v4, %v359_v50  ;;  %v717_v7 = vpop.f32.mrb[11].mxu0 }
  0xff   : > { %574 = vst [vmem:[%s170_s14 + $0x8] sm:$0xff] %v571_v5  ;;  %v562_v8 = vadd.f32 %v556_v1, %v462_v6 }
 0x101   : > { %v572_v9 = vadd.f32 %v656_v57, %v562_v8 }
 0x103   : > { %575 = vst [vmem:[%s170_s14 + $0x10] sm:$0xf] %v572_v9 }
 0x104 PF: > { %s13_s12 = sadd.s32 1, %s762_s12  }
 0x105   : > { %p10_p4 = scmp.ge.s32.totalorder %s13_s12, 4  }
 0x107   :  { %12 = sbr.rel (!%p10_p4) target bundleno = 1 (0x1), region = 65 }

// kernel: pre_two_stem.3
= control target key start
LH: loop header
LB: loop body
LE: loop exit
PB: predicated region body
PF: predicated region fallthrough
CT: control target
= control target key end

     0   :  { %s1149_s12 = smov 0   ;;  %s1438_s0 = inlined_call_operand.vmem [shape: f32[2,89,12], index: 0, kind: input, shape index: {}]   ;;  %s1439_s1 = inlined_call_operand.vmem [shape: f32[4,12,128], index: 1, kind: input, shape index: {}]   ;;  %s1440_s2 = inlined_call_operand.vmem [shape: f32[1,128], index: 2, kind: input, shape index: {}]   ;;  %s1441_s3 = inlined_call_operand.vmem [shape: f32[2,72,128], index: 3, kind: output, shape index: {}]  }
   0x1 LB: > { %s863_s13 = sadd.s32 4294967295, %s1123_s12   ;;  %p867_p0 = scmp.ge.s32.totalorder %s1123_s12, 1  ;;  %s1123_s12 = sphi %s1149_s12, %s13_s12  }
   0x2   : > { %p137_p1 = scmp.lt.s32.totalorder %s1123_s12, 3 }
   0x4   : > { %p138_p2 = pnand %p867_p0, %p137_p1 }
   0x5   : > { %v870_v0 = vld [vmem:[%s1439_s1 + $0x10] sm:$0xff] (!%p138_p2)  ;;  %v871_v1 = vld [vmem:[%s1439_s1 + $0x18] sm:$0xf] (!%p138_p2)  ;;  %vm236_vm0 = vcmask (!%p138_p2), 1043456   ;;  %v1125_v2 = vmov (!%p138_p2), 0.0|0.0   ;;  %vm1126_vm1 = vmmov (!%p138_p2), 1  }
   0x6   : > { %141 = sbr.rel (%p138_p2) target bundleno = 310 (0x136), region = 32  ;;  %1087 = vmatprep.subr.bf16.mxu0 (!%p138_p2), %v1125_v2  ;;  %v1088_v3 = vpack.c.bf16 (!%p138_p2), %v871_v1, %v870_v0  ;;  %vm1163_vm2 = vmpackc.low (!%p138_p2), %vm236_vm0, %vm1126_vm1  ;;  %1091 = vmatprep.subr.bf16.mxu1 (!%p138_p2), %v1125_v2  ;;  %v182_v5 = vld [vmem:[%s1439_s1] sm:$0xff] (!%p138_p2)  ;;  %v183_v6 = vld [vmem:[%s1439_s1 + $0x8] sm:$0xf] (!%p138_p2)  ;;  %p161_p3 = scmp.lt.s32.totalorder (!%p138_p2), %s863_s13, 1  ;;  %vm1127_vm3 = vmmov (!%p138_p2), 0  }
   0x7   : > { %v1092_v7 = vpack.c.bf16 (!%p138_p2), %v183_v6, %v182_v5  ;;  %v1128_v8 = vmov (!%p138_p2), 0.0   ;;  %v904_v9 = vld [vmem:[%s1439_s1 + $0x30] sm:$0xff] (!%p138_p2)  ;;  %v905_v10 = vld [vmem:[%s1439_s1 + $0x38] sm:$0xf] (!%p138_p2)  ;;  %vm217_vm4 = vcmask (!%p138_p2), 97280   ;;  %v892_v11 = vld [vmem:[%s1439_s1 + $0x20] sm:$0xff] (!%p138_p2) }
   0x8   : > { %967 = vmatprep.mubr.msk.f32.mxu0 (!%p138_p2), %vm1127_vm3, %v1128_v8  ;;  %998 = vmatprep.mubr.msk.f32.mxu1 (!%p138_p2), %vm1127_vm3, %v1128_v8  ;;  %v893_v12 = vld [vmem:[%s1439_s1 + $0x28] sm:$0xf] (!%p138_p2)  ;;  %v1100_v13 = vpack.c.bf16 (!%p138_p2), %v905_v10, %v904_v9  ;;  %vm197_vm5 = vcmask (!%p138_p2), 1046528   ;;  %vm614_vm6 = vcmask (!%p138_p2), 1045504  }
   0x9   : > { %1090 = vmatpush3.bf16.msk.msra.mxu0 (!%p138_p2), %vm1163_vm2, %v1088_v3  ;;  %1094 = vmatpush3.bf16.msk.msra.mxu1 (!%p138_p2), %vm1163_vm2, %v1092_v7  ;;  %v1096_v19 = vpack.c.bf16 (!%p138_p2), %v893_v12, %v892_v11 }
   0xa   : > { %1095 = vmatprep.subr.bf16.mxu0 (!%p138_p2), %v1125_v2  ;;  %1099 = vmatprep.subr.bf16.mxu1 (!%p138_p2), %v1125_v2 }
   0xd   : > { %s1445_s13 = smov (!%p161_p3, %s863_s13), 1 }
   0xe   : > { %s1103_s26 = smul.u32 96, %s1445_s13 }
   0xf   : > { %s1104_s7 = smul.u32 72, %s1445_s13 }
  0x10   : > { %s1199_s6 = scalar_lea.vmem %s1438_s0, %s1103_s26 }
  0x11   : > { %v171_v14 = vld [vmem:[%s1199_s6] sm:$0xff]  ;;  %v1203_v15 = vld [vmem:[%s1199_s6 + $0x8] sm:$0xff]  ;;  %v1206_v16 = vld [vmem:[%s1199_s6 + $0x10] sm:$0xff]  ;;  %s1412_s14 = scalar_lea.vmem %s1441_s3, %s1104_s7 }
  0x12   : > { %v198_v17 = vrot.slane %v171_v14, 1  ;;  %v199_v18 = vrot.slane %v1203_v15, 1  ;;  %999 = vmatmul.mubr.msk.f32.vlgmr.msra.gmra.mrb[0].mxu1 %vm217_vm4, %v171_v14  ;;  %v201_v20 = vrot.slane %v1206_v16, 1  ;;  %v1216_v21 = vld [vmem:[%s1199_s6 + $0x18] sm:$0xff]  ;;  %v1231_v25 = vld [vmem:[%s1199_s6 + $0x20] sm:$0xff]  ;;  %v1234_v26 = vld [vmem:[%s1199_s6 + $0x48] sm:$0xff] }
  0x13   : > { %1102 = vmatpush3.bf16.msk.msra.mxu1 %vm1163_vm2, %v1100_v13  ;;  %1001 = vmatprep.mubr.msk.f32.mxu1 %vm1127_vm3, %v1128_v8  ;;  %v203_v24 = vrot.slane %v1216_v21, 1  ;;  %v1237_v27 = vld [vmem:[%s1199_s6 + $0x50] sm:$0xff]  ;;  %v205_v29 = vrot.slane %v1231_v25, 1  ;;  %v215_v30 = vrot.slane %v1234_v26, 1  ;;  %v1252_v32 = vld [vmem:[%s1199_s6 + $0x28] sm:$0xff]  ;;  %v1279_v39 = vld [vmem:[%s1199_s6 + $0x38] sm:$0xff] }
  0x14   : > { %v200_v22 = vsel %vm197_vm5, %v198_v17, %v199_v18  ;;  %v1225_v23 = vsel %vm197_vm5, %v199_v18, %v201_v20  ;;  %v485_v31 = vrot.slane %v1237_v27, 1  ;;  %v207_v35 = vrot.slane %v1252_v32, 1  ;;  %v1267_v36 = vld [vmem:[%s1199_s6 + $0x30] sm:$0xff]  ;;  %v1291_v42 = vld [vmem:[%s1199_s6 + $0x40] sm:$0xff] }
  0x15   : > { %968 = vmatmul.mubr.msk.f32.vlgmr.msra.gmra.mrb[0].mxu0 %vm217_vm4, %v200_v22  ;;  %v204_v28 = vsel %vm197_vm5, %v201_v20, %v203_v24  ;;  %v206_v34 = vsel %vm197_vm5, %v203_v24, %v205_v29  ;;  %v209_v38 = vrot.slane %v1267_v36, 1  ;;  %v211_v41 = vrot.slane %v1279_v39, 1 }
  0x16   : > { %1098 = vmatpush3.bf16.msk.msra.mxu0 %vm1163_vm2, %v1096_v19  ;;  %970 = vmatprep.mubr.msk.f32.mxu0 %vm1127_vm3, %v1128_v8  ;;  %v1257_v33 = vsel %vm197_vm5, %v215_v30, %v485_v31  ;;  %v208_v37 = vsel %vm197_vm5, %v205_v29, %v207_v35  ;;  %v213_v44 = vrot.slane %v1291_v42, 1  ;;  %v615_v46 = vrot.slane %v1203_v15, 2 }
  0x17   : > { %1002 = vmatmul.mubr.msk.f32.gmra.mrb[2].mxu1 %vm217_vm4, %v1203_v15  ;;  %v210_v40 = vsel %vm197_vm5, %v207_v35, %v209_v38  ;;  %v212_v43 = vsel %vm197_vm5, %v209_v38, %v211_v41  ;;  %v616_v47 = vrot.slane %v1206_v16, 2  ;;  %v618_v50 = vrot.slane %v1216_v21, 2 }
  0x18   : > { %1004 = vmatprep.mubr.msk.f32.mxu1 %vm1127_vm3, %v1128_v8  ;;  %v214_v45 = vsel %vm197_vm5, %v211_v41, %v213_v44  ;;  %v216_v48 = vsel %vm197_vm5, %v213_v44, %v215_v30  ;;  %v620_v52 = vrot.slane %v1231_v25, 2  ;;  %v622_v54 = vrot.slane %v1252_v32, 2 }
  0x19   : > { %971 = vmatmul.mubr.msk.f32.gmra.mrb[2].mxu0 %vm217_vm4, %v1225_v23  ;;  %v617_v49 = vsel %vm614_vm6, %v615_v46, %v616_v47  ;;  %v619_v51 = vsel %vm614_vm6, %v616_v47, %v618_v50  ;;  %v624_v56 = vrot.slane %v1267_v36, 2  ;;  %v626_v58 = vrot.slane %v1279_v39, 2 }
  0x1a   : > { %973 = vmatprep.mubr.msk.f32.mxu0 %vm1127_vm3, %v1128_v8  ;;  %v621_v53 = vsel %vm614_vm6, %v618_v50, %v620_v52  ;;  %v623_v55 = vsel %vm614_vm6, %v620_v52, %v622_v54  ;;  %v628_v60 = vrot.slane %v1291_v42, 2  ;;  %v630_v62 = vrot.slane %v1234_v26, 2  ;;  %v1406_v52 = vld [vmem:[%s1440_s2] ss:$0 sm:$0xff] }
  0x1b   : > { %1005 = vmatmul.mubr.msk.f32.gmra.mrb[4].mxu1 %vm217_vm4, %v1206_v16  ;;  %v625_v57 = vsel %vm614_vm6, %v622_v54, %v624_v56  ;;  %v627_v59 = vsel %vm614_vm6, %v624_v56, %v626_v58  ;;  %v632_v0 = vrot.slane %v1237_v27, 2 }
  0x1c   : > { %1007 = vmatprep.mubr.msk.f32.mxu1 %vm1127_vm3, %v1128_v8  ;;  %v629_v61 = vsel %vm614_vm6, %v626_v58, %v628_v60  ;;  %v631_v63 = vsel %vm614_vm6, %v628_v60, %v630_v62 }
  0x1d   : > { %974 = vmatmul.mubr.msk.f32.gmra.mrb[4].mxu0 %vm217_vm4, %v204_v28  ;;  %v633_v1 = vsel %vm614_vm6, %v630_v62, %v632_v0 }
  0x1e   : > { %976 = vmatprep.mubr.msk.f32.mxu0 %vm1127_vm3, %v1128_v8 }
  0x1f   : > { %1008 = vmatmul.mubr.msk.f32.gmra.mrb[6].mxu1 %vm217_vm4, %v1216_v21 }
  0x20   : > { %1010 = vmatprep.mubr.msk.f32.mxu1 %vm1127_vm3, %v1128_v8 }
  0x21   : > { %977 = vmatmul.mubr.msk.f32.gmra.mrb[6].mxu0 %vm217_vm4, %v206_v34 }
  0x22   : > { %979 = vmatprep.mubr.msk.f32.mxu0 %vm1127_vm3, %v1128_v8 }
  0x23   : > { %1011 = vmatmul.mubr.msk.f32.gmra.mrb[8].mxu1 %vm217_vm4, %v1231_v25 }
  0x24   : > { %1013 = vmatprep.mubr.msk.f32.mxu1 %vm1127_vm3, %v1128_v8 }
  0x25   : > { %980 = vmatmul.mubr.msk.f32.gmra.mrb[8].mxu0 %vm217_vm4, %v208_v37 }
  0x26   : > { %982 = vmatprep.mubr.msk.f32.mxu0 %vm1127_vm3, %v1128_v8 }
  0x27   : > { %1014 = vmatmul.mubr.msk.f32.gmra.mrb[10].mxu1 %vm217_vm4, %v1252_v32 }
  0x28   : > { %1016 = vmatprep.mubr.msk.f32.mxu1 %vm1127_vm3, %v1128_v8 }
  0x29   : > { %983 = vmatmul.mubr.msk.f32.gmra.mrb[10].mxu0 %vm217_vm4, %v210_v40 }
  0x2a   : > { %985 = vmatprep.mubr.msk.f32.mxu0 %vm1127_vm3, %v1128_v8 }
  0x2b   : > { %1017 = vmatmul.mubr.msk.f32.gmra.mrb[12].mxu1 %vm217_vm4, %v1267_v36 }
  0x2c   : > { %1019 = vmatprep.mubr.msk.f32.mxu1 %vm1127_vm3, %v1128_v8 }
  0x2d   : > { %986 = vmatmul.mubr.msk.f32.gmra.mrb[12].mxu0 %vm217_vm4, %v212_v43 }
  0x2e   : > { %988 = vmatprep.mubr.msk.f32.mxu0 %vm1127_vm3, %v1128_v8 }
  0x2f   : > { %1020 = vmatmul.mubr.msk.f32.gmra.mrb[14].mxu1 %vm217_vm4, %v1279_v39 }
  0x30   : > { %1022 = vmatprep.mubr.msk.f32.mxu1 %vm1127_vm3, %v1128_v8 }
  0x31   : > { %989 = vmatmul.mubr.msk.f32.gmra.mrb[14].mxu0 %vm217_vm4, %v214_v45 }
  0x32   : > { %991 = vmatprep.mubr.msk.f32.mxu0 %vm1127_vm3, %v1128_v8 }
  0x33   : > { %1023 = vmatmul.mubr.msk.f32.gmra.mrb[16].mxu1 %vm217_vm4, %v1291_v42 }
  0x34   : > { %1060 = vmatprep.mubr.msk.f32.mxu1 %vm1127_vm3, %v1128_v8 }
  0x35   : > { %992 = vmatmul.mubr.msk.f32.gmra.mrb[16].mxu0 %vm217_vm4, %v216_v48 }
  0x36   : > { %1029 = vmatprep.mubr.msk.f32.mxu0 %vm1127_vm3, %v1128_v8 }
  0x37   : > { %1061 = vmatmul.mubr.msk.f32.vlgmr.msra.gmra.mrb[18].mxu1 %vm217_vm4, %v617_v49 }
  0x38   : > { %1063 = vmatprep.mubr.msk.f32.mxu1 %vm1127_vm3, %v1128_v8 }
  0x39   : > { %1030 = vmatmul.mubr.msk.f32.vlgmr.msra.gmra.mrb[18].mxu0 %vm217_vm4, %v1225_v23 }
  0x3a   : > { %1032 = vmatprep.mubr.msk.f32.mxu0 %vm1127_vm3, %v1128_v8 }
  0x3b   : > { %1064 = vmatmul.mubr.msk.f32.gmra.mrb[20].mxu1 %vm217_vm4, %v619_v51 }
  0x3c   : > { %1066 = vmatprep.mubr.msk.f32.mxu1 %vm1127_vm3, %v1128_v8 }
  0x3d   : > { %1033 = vmatmul.mubr.msk.f32.gmra.mrb[20].mxu0 %vm217_vm4, %v204_v28 }
  0x3e   : > { %1035 = vmatprep.mubr.msk.f32.mxu0 %vm1127_vm3, %v1128_v8 }
  0x3f   : > { %1067 = vmatmul.mubr.msk.f32.gmra.mrb[22].mxu1 %vm217_vm4, %v621_v53 }
  0x40   : > { %1069 = vmatprep.mubr.msk.f32.mxu1 %vm1127_vm3, %v1128_v8 }
  0x41   : > { %1036 = vmatmul.mubr.msk.f32.gmra.mrb[22].mxu0 %vm217_vm4, %v206_v34 }
  0x42   : > { %1038 = vmatprep.mubr.msk.f32.mxu0 %vm1127_vm3, %v1128_v8 }
  0x43   : > { %1070 = vmatmul.mubr.msk.f32.gmra.mrb[24].mxu1 %vm217_vm4, %v623_v55 }
  0x44   : > { %1072 = vmatprep.mubr.msk.f32.mxu1 %vm1127_vm3, %v1128_v8 }
  0x45   : > { %1039 = vmatmul.mubr.msk.f32.gmra.mrb[24].mxu0 %vm217_vm4, %v208_v37 }
  0x46   : > { %1041 = vmatprep.mubr.msk.f32.mxu0 %vm1127_vm3, %v1128_v8 }
  0x47   : > { %1073 = vmatmul.mubr.msk.f32.gmra.mrb[26].mxu1 %vm217_vm4, %v625_v57 }
  0x48   : > { %1075 = vmatprep.mubr.msk.f32.mxu1 %vm1127_vm3, %v1128_v8 }
  0x49   : > { %1042 = vmatmul.mubr.msk.f32.gmra.mrb[26].mxu0 %vm217_vm4, %v210_v40 }
  0x4a   : > { %1044 = vmatprep.mubr.msk.f32.mxu0 %vm1127_vm3, %v1128_v8 }
  0x4b   : > { %1076 = vmatmul.mubr.msk.f32.gmra.mrb[28].mxu1 %vm217_vm4, %v627_v59 }
  0x4c   : > { %1078 = vmatprep.mubr.msk.f32.mxu1 %vm1127_vm3, %v1128_v8 }
  0x4d   : > { %1045 = vmatmul.mubr.msk.f32.gmra.mrb[28].mxu0 %vm217_vm4, %v212_v43 }
  0x4e   : > { %1047 = vmatprep.mubr.msk.f32.mxu0 %vm1127_vm3, %v1128_v8 }
  0x4f   : > { %1079 = vmatmul.mubr.msk.f32.gmra.mrb[30].mxu1 %vm217_vm4, %v629_v61 }
  0x50   : > { %1081 = vmatprep.mubr.msk.f32.mxu1 %vm1127_vm3, %v1128_v8 }
  0x51   : > { %1048 = vmatmul.mubr.msk.f32.gmra.mrb[30].mxu0 %vm217_vm4, %v214_v45 }
  0x52   : > { %1050 = vmatprep.mubr.msk.f32.mxu0 %vm1127_vm3, %v1128_v8 }
  0x53   : > { %1082 = vmatmul.mubr.msk.f32.gmra.mrb[32].mxu1 %vm217_vm4, %v631_v63 }
  0x54   : > { %1084 = vmatprep.mubr.msk.f32.mxu1 %vm1127_vm3, %v1128_v8 }
  0x55   : > { %1051 = vmatmul.mubr.msk.f32.gmra.mrb[32].mxu0 %vm217_vm4, %v216_v48 }
  0x56   : > { %1053 = vmatprep.mubr.msk.f32.mxu0 %vm1127_vm3, %v1128_v8 }
  0x57   : > { %1085 = vmatmul.mubr.msk.f32.gmra.mrb[34].mxu1 %vm217_vm4, %v633_v1 }
  0x59   : > { %1054 = vmatmul.mubr.msk.f32.gmra.mrb[34].mxu0 %vm217_vm4, %v1257_v33 }
  0xe5   : > { %v437_v2 = vpop.f32.mrb[0].mxu1 }
  0xe6   : > { %v1000_v3 = vpop.f32.mrb[1].mxu1 }
  0xe8   : > { %v306_v4 = vpop.f32.mrb[0].mxu0 }
  0xe9   : > { %v438_v5 = vadd.f32 %v437_v2, %v306_v4  ;;  %v969_v6 = vpop.f32.mrb[1].mxu0 }
  0xea   : > { %v442_v7 = vpop.f32.mrb[2].mxu1 }
  0xeb   : > { %v1003_v9 = vpop.f32.mrb[3].mxu1 }
  0xec   : > { %v311_v10 = vpop.f32.mrb[2].mxu0 }
  0xed   : > { %v443_v11 = vadd.f32 %v442_v7, %v311_v10  ;;  %v972_v12 = vpop.f32.mrb[3].mxu0 }
  0xee   : > { %v447_v13 = vpop.f32.mrb[4].mxu1 }
  0xef   : > { %v1006_v14 = vpop.f32.mrb[5].mxu1 }
  0xf0   : > { %v316_v15 = vpop.f32.mrb[4].mxu0 }
  0xf1   : > { %v448_v16 = vadd.f32 %v447_v13, %v316_v15  ;;  %v975_v8 = vpop.f32.mrb[5].mxu0 }
  0xf2   : > { %v452_v17 = vpop.f32.mrb[6].mxu1 }
  0xf3   : > { %v1009_v18 = vpop.f32.mrb[7].mxu1 }
  0xf4   : > { %v321_v19 = vpop.f32.mrb[6].mxu0 }
  0xf5   : > { %v453_v20 = vadd.f32 %v452_v17, %v321_v19  ;;  %v978_v21 = vpop.f32.mrb[7].mxu0 }
  0xf6   : > { %v457_v22 = vpop.f32.mrb[8].mxu1 }
  0xf7   : > { %v1012_v23 = vpop.f32.mrb[9].mxu1 }
  0xf8   : > { %v326_v24 = vpop.f32.mrb[8].mxu0 }
  0xf9   : > { %v458_v25 = vadd.f32 %v457_v22, %v326_v24  ;;  %v981_v26 = vpop.f32.mrb[9].mxu0 }
  0xfa   : > { %v462_v27 = vpop.f32.mrb[10].mxu1 }
  0xfb   : > { %v1015_v28 = vpop.f32.mrb[11].mxu1 }
  0xfc   : > { %v331_v29 = vpop.f32.mrb[10].mxu0 }
  0xfd   : > { %v1394_v30 = vadd.f32 %v462_v27, %v331_v29  ;;  %v984_v31 = vpop.f32.mrb[11].mxu0 }
  0xfe   : > { %v467_v32 = vpop.f32.mrb[12].mxu1 }
  0xff   : > { %v1018_v33 = vpop.f32.mrb[13].mxu1 }
 0x100   : > { %v336_v34 = vpop.f32.mrb[12].mxu0 }
 0x101   : > { %v1396_v35 = vadd.f32 %v467_v32, %v336_v34  ;;  %v987_v36 = vpop.f32.mrb[13].mxu0 }
 0x102   : > { %v472_v37 = vpop.f32.mrb[14].mxu1 }
 0x103   : > { %v1021_v38 = vpop.f32.mrb[15].mxu1 }
 0x104   : > { %v341_v39 = vpop.f32.mrb[14].mxu0 }
 0x105   : > { %v1398_v40 = vadd.f32 %v472_v37, %v341_v39  ;;  %v990_v41 = vpop.f32.mrb[15].mxu0 }
 0x106   : > { %v477_v42 = vpop.f32.mrb[16].mxu1 }
 0x107   : > { %v1024_v43 = vpop.f32.mrb[17].mxu1 }
 0x108   : > { %v346_v44 = vpop.f32.mrb[16].mxu0 }
 0x109   : > { %v1400_v45 = vadd.f32 %v477_v42, %v346_v44  ;;  %v993_v46 = vpop.f32.mrb[17].mxu0 }
 0x10a   : > { %v721_v47 = vpop.f32.mrb[18].mxu1 }
 0x10b   : > { %v1062_v48 = vpop.f32.mrb[19].mxu1 }
 0x10c   : > { %v558_v49 = vpop.f32.mrb[18].mxu0 }
 0x10d   : > { %v602_v50 = vadd.f32 %v558_v49, %v438_v5  ;;  %v1031_v51 = vpop.f32.mrb[19].mxu0 }
 0x10e   : > { %v726_v53 = vpop.f32.mrb[20].mxu1 }
 0x10f   : > { %v765_v54 = vadd.f32 %v721_v47, %v602_v50  ;;  %v1065_v55 = vpop.f32.mrb[21].mxu1 }
 0x110   : > { %v563_v56 = vpop.f32.mrb[20].mxu0 }
 0x111   : > { %v781_v57 = vadd.f32 %v1406_v52, %v765_v54  ;;  %v603_v58 = vadd.f32 %v563_v56, %v443_v11  ;;  %v1034_v59 = vpop.f32.mrb[21].mxu0 }
 0x112   : > { %v731_v60 = vpop.f32.mrb[22].mxu1 }
 0x113   : > { %v790_v61 = vmax.f32 %v781_v57, 0.0  ;;  %v766_v62 = vadd.f32 %v726_v53, %v603_v58  ;;  %v1068_v63 = vpop.f32.mrb[23].mxu1 }
 0x114   : > { %v568_v0 = vpop.f32.mrb[22].mxu0 }
 0x115   : > { %799 = vst [vmem:[%s1412_s14] sm:$0xff] %v790_v61  ;;  %v782_v1 = vadd.f32 %v1406_v52, %v766_v62  ;;  %v604_v2 = vadd.f32 %v568_v0, %v448_v16  ;;  %v1037_v3 = vpop.f32.mrb[23].mxu0 }
 0x116   : > { %v736_v4 = vpop.f32.mrb[24].mxu1 }
 0x117   : > { %v791_v5 = vmax.f32 %v782_v1, 0.0  ;;  %v767_v6 = vadd.f32 %v731_v60, %v604_v2  ;;  %v1071_v7 = vpop.f32.mrb[25].mxu1 }
 0x118   : > { %v573_v9 = vpop.f32.mrb[24].mxu0 }
 0x119   : > { %800 = vst [vmem:[%s1412_s14 + $0x8] sm:$0xff] %v791_v5  ;;  %v783_v10 = vadd.f32 %v1406_v52, %v767_v6  ;;  %v605_v11 = vadd.f32 %v573_v9, %v453_v20  ;;  %v1040_v12 = vpop.f32.mrb[25].mxu0 }
 0x11a   : > { %v741_v13 = vpop.f32.mrb[26].mxu1 }
 0x11b   : > { %v792_v14 = vmax.f32 %v783_v10, 0.0  ;;  %v768_v15 = vadd.f32 %v736_v4, %v605_v11  ;;  %v1074_v8 = vpop.f32.mrb[27].mxu1 }
 0x11c   : > { %v578_v17 = vpop.f32.mrb[26].mxu0 }
 0x11d   : > { %801 = vst [vmem:[%s1412_s14 + $0x10] sm:$0xff] %v792_v14  ;;  %v784_v16 = vadd.f32 %v1406_v52, %v768_v15  ;;  %v606_v18 = vadd.f32 %v578_v17, %v458_v25  ;;  %v1043_v19 = vpop.f32.mrb[27].mxu0 }
 0x11e   : > { %v746_v21 = vpop.f32.mrb[28].mxu1 }
 0x11f   : > { %v793_v22 = vmax.f32 %v784_v16, 0.0  ;;  %v769_v23 = vadd.f32 %v741_v13, %v606_v18  ;;  %v1077_v24 = vpop.f32.mrb[29].mxu1 }
 0x120   : > { %v583_v26 = vpop.f32.mrb[28].mxu0 }
 0x121   : > { %802 = vst [vmem:[%s1412_s14 + $0x18] sm:$0xff] %v793_v22  ;;  %v785_v20 = vadd.f32 %v1406_v52, %v769_v23  ;;  %v607_v27 = vadd.f32 %v583_v26, %v1394_v30  ;;  %v1046_v28 = vpop.f32.mrb[29].mxu0 }
 0x122   : > { %v751_v29 = vpop.f32.mrb[30].mxu1 }
 0x123   : > { %v794_v31 = vmax.f32 %v785_v20, 0.0  ;;  %v770_v32 = vadd.f32 %v746_v21, %v607_v27  ;;  %v1080_v33 = vpop.f32.mrb[31].mxu1 }
 0x124   : > { %v588_v34 = vpop.f32.mrb[30].mxu0 }
 0x125   : > { %803 = vst [vmem:[%s1412_s14 + $0x20] sm:$0xff] %v794_v31  ;;  %v786_v25 = vadd.f32 %v1406_v52, %v770_v32  ;;  %v608_v36 = vadd.f32 %v588_v34, %v1396_v35  ;;  %v1049_v37 = vpop.f32.mrb[31].mxu0 }
 0x126   : > { %v756_v38 = vpop.f32.mrb[32].mxu1 }
 0x127   : > { %v795_v39 = vmax.f32 %v786_v25, 0.0  ;;  %v771_v41 = vadd.f32 %v751_v29, %v608_v36  ;;  %v1083_v42 = vpop.f32.mrb[33].mxu1 }
 0x128   : > { %v593_v43 = vpop.f32.mrb[32].mxu0 }
 0x129   : > { %804 = vst [vmem:[%s1412_s14 + $0x28] sm:$0xff] %v795_v39  ;;  %v787_v30 = vadd.f32 %v1406_v52, %v771_v41  ;;  %v609_v44 = vadd.f32 %v593_v43, %v1398_v40  ;;  %v1052_v46 = vpop.f32.mrb[33].mxu0 }
 0x12a   : > { %v761_v47 = vpop.f32.mrb[34].mxu1 }
 0x12b   : > { %v796_v48 = vmax.f32 %v787_v30, 0.0  ;;  %v772_v49 = vadd.f32 %v756_v38, %v609_v44  ;;  %v1086_v50 = vpop.f32.mrb[35].mxu1 }
 0x12c   : > { %v598_v35 = vpop.f32.mrb[34].mxu0 }
 0x12d   : > { %805 = vst [vmem:[%s1412_s14 + $0x30] sm:$0xff] %v796_v48  ;;  %v788_v51 = vadd.f32 %v1406_v52, %v772_v49  ;;  %v610_v53 = vadd.f32 %v598_v35, %v1400_v45  ;;  %v1055_v54 = vpop.f32.mrb[35].mxu0 }
 0x12f   : > { %v797_v55 = vmax.f32 %v788_v51, 0.0  ;;  %v773_v56 = vadd.f32 %v761_v47, %v610_v53 }
 0x131   : > { %806 = vst [vmem:[%s1412_s14 + $0x38] sm:$0xff] %v797_v55  ;;  %v789_v57 = vadd.f32 %v1406_v52, %v773_v56 }
 0x133   : > { %v798_v58 = vmax.f32 %v789_v57, 0.0 }
 0x135   : > { %807 = vst [vmem:[%s1412_s14 + $0x40] sm:$0xff] %v798_v58 }
 0x136 PF: > { %s13_s12 = sadd.s32 1, %s1123_s12  }
 0x137   : > { %p10_p4 = scmp.ge.s32.totalorder %s13_s12, 4  }
 0x139   :  { %12 = sbr.rel (!%p10_p4) target bundleno = 1 (0x1), region = 65 }

// kernel: pre_two_stem.5
= control target key start
LH: loop header
LB: loop body
LE: loop exit
PB: predicated region body
PF: predicated region fallthrough
CT: control target
= control target key end

     0   :  { %s713_s12 = smov 0   ;;  %s793_s0 = inlined_call_operand.vmem [shape: f32[2,17,32], index: 0, kind: input, shape index: {}]   ;;  %s794_s1 = inlined_call_operand.vmem [shape: f32[4,32,128], index: 1, kind: input, shape index: {}]   ;;  %s795_s2 = inlined_call_operand.vmem [shape: f32[1,128], index: 2, kind: input, shape index: {}]   ;;  %s796_s3 = inlined_call_operand.vmem [shape: f32[2,6,128], index: 3, kind: output, shape index: {}]  }
   0x1 LB: > { %s556_s13 = sadd.s32 4294967295, %s688_s12   ;;  %p560_p0 = scmp.ge.s32.totalorder %s688_s12, 1  ;;  %s688_s12 = sphi %s713_s12, %s13_s12  }
   0x2   : > { %p137_p1 = scmp.lt.s32.totalorder %s688_s12, 3 }
   0x4   : > { %p138_p2 = pnand %p560_p0, %p137_p1 }
   0x5   : > { %v563_v0 = vld [vmem:[%s794_s1 + $0x20] sm:$0xff] (!%p138_p2)  ;;  %v564_v1 = vld [vmem:[%s794_s1 + $0x28] sm:$0xff] (!%p138_p2)  ;;  %v690_v3 = vmov (!%p138_p2), 0.0|0.0   ;;  %v565_v6 = vld [vmem:[%s794_s1 + $0x30] sm:$0xff] (!%p138_p2)  ;;  %p160_p3 = scmp.lt.s32.totalorder (!%p138_p2), %s556_s13, 1  ;;  %vm691_vm0 = vmmov (!%p138_p2), 0  }
   0x6   : > { %141 = sbr.rel (%p138_p2) target bundleno = 249 (0xf9), region = 32  ;;  %v173_v2 = vld [vmem:[%s794_s1] sm:$0xff] (!%p138_p2)  ;;  %646 = vmatprep.subr.bf16.mxu0 (!%p138_p2), %v690_v3  ;;  %v647_v4 = vpack.c.bf16 (!%p138_p2), %v564_v1, %v563_v0  ;;  %652 = vmatprep.subr.bf16.mxu1 (!%p138_p2), %v690_v3  ;;  %v174_v5 = vld [vmem:[%s794_s1 + $0x8] sm:$0xff] (!%p138_p2)  ;;  %v566_v7 = vld [vmem:[%s794_s1 + $0x38] sm:$0xff] (!%p138_p2)  ;;  %v692_v11 = vmov (!%p138_p2), 0.0   ;;  %vm184_vm1 = vcmask (!%p138_p2), 261120  }
   0x7   : > { %v653_v8 = vpack.c.bf16 (!%p138_p2), %v174_v5, %v173_v2  ;;  %v175_v9 = vld [vmem:[%s794_s1 + $0x10] sm:$0xff] (!%p138_p2)  ;;  %v176_v10 = vld [vmem:[%s794_s1 + $0x18] sm:$0xff] (!%p138_p2)  ;;  %610 = vmatprep.mubr.msk.f32.mxu0 (!%p138_p2), %vm691_vm0, %v692_v11  ;;  %621 = vmatprep.mubr.msk.f32.mxu1 (!%p138_p2), %vm691_vm0, %v692_v11  ;;  %v650_v12 = vpack.c.bf16 (!%p138_p2), %v566_v7, %v565_v6  ;;  %v574_v14 = vld [vmem:[%s794_s1 + $0x60] sm:$0xff] (!%p138_p2)  ;;  %vm417_vm2 = vcmask (!%p138_p2), 1043456   ;;  %vm335_vm3 = vcmask (!%p138_p2), 1044480  }
   0x8   : > { %648 = vmatpush3.bf16.msra.mxu0 (!%p138_p2), %v647_v4  ;;  %v656_v13 = vpack.c.bf16 (!%p138_p2), %v176_v10, %v175_v9  ;;  %v575_v15 = vld [vmem:[%s794_s1 + $0x68] sm:$0xff] (!%p138_p2)  ;;  %v569_v16 = vld [vmem:[%s794_s1 + $0x40] sm:$0xff] (!%p138_p2)  ;;  %v576_v22 = vld [vmem:[%s794_s1 + $0x70] sm:$0xff] (!%p138_p2) }
   0x9   : > { %654 = vmatpush3.bf16.msra.mxu1 (!%p138_p2), %v653_v8  ;;  %649 = vmatprep.subr.bf16.mxu0 (!%p138_p2), %v690_v3  ;;  %v570_v17 = vld [vmem:[%s794_s1 + $0x48] sm:$0xff] (!%p138_p2)  ;;  %v665_v19 = vpack.c.bf16 (!%p138_p2), %v575_v15, %v574_v14  ;;  %v577_v23 = vld [vmem:[%s794_s1 + $0x78] sm:$0xff] (!%p138_p2)  ;;  %v571_v27 = vld [vmem:[%s794_s1 + $0x50] sm:$0xff] (!%p138_p2) }
   0xa   : > { %655 = vmatprep.subr.bf16.mxu1 (!%p138_p2), %v690_v3  ;;  %v659_v25 = vpack.c.bf16 (!%p138_p2), %v570_v17, %v569_v16  ;;  %v572_v28 = vld [vmem:[%s794_s1 + $0x58] sm:$0xff] (!%p138_p2)  ;;  %v668_v29 = vpack.c.bf16 (!%p138_p2), %v577_v23, %v576_v22  ;;  %v579_v47 = vld [vmem:[%s795_s2] ss:$0 sm:$0xff] (!%p138_p2) }
   0xb   : > { %v662_v32 = vpack.c.bf16 (!%p138_p2), %v572_v28, %v571_v27 }
   0xc   : > { %651 = vmatpush3.bf16.msra.mxu0 (!%p138_p2), %v650_v12 }
   0xd   : > { %s798_s13 = smov (!%p160_p3, %s556_s13), 1  ;;  %657 = vmatpush3.bf16.msra.mxu1 %v656_v13  ;;  %658 = vmatprep.subr.bf16.mxu0 %v690_v3 }
   0xe   : > { %s670_s30 = smul.u32 24, %s798_s13  ;;  %664 = vmatprep.subr.bf16.mxu1 %v690_v3  ;;  %s562_s25 = sshll.u32 %s798_s13, 3 }
  0x10   : > { %s164_s10 = scalar_lea.vmem %s793_s0, %s670_s30  ;;  %s168_s30 = scalar_lea.vmem %s796_s3, %s562_s25 }
  0x11   : > { %v169_v18 = vld [vmem:[%s164_s10] sm:$0xff]  ;;  %v170_v20 = vld [vmem:[%s164_s10 + $0x8] sm:$0xff] }
  0x12   : > { %v171_v21 = vmax.f32 %v169_v18, 0.0  ;;  %v172_v24 = vmax.f32 %v170_v20, 0.0 }
  0x14   : > { %v183_v26 = vrot.slane %v171_v21, 1  ;;  %622 = vmatmul.mubr.msk.f32.vlgmr.msra.gmra.mrb[0].mxu1 %vm184_vm1, %v171_v21  ;;  %v418_v30 = vrot.slane %v171_v21, 4  ;;  %v419_v31 = vrot.slane %v172_v24, 4  ;;  %v336_v33 = vrot.slane %v171_v21, 3 }
  0x15   : > { %666 = vmatpush3.bf16.msra.mxu1 %v665_v19  ;;  %643 = vmatprep.mubr.msk.f32.mxu1 %vm691_vm0, %v692_v11  ;;  %v337_v34 = vrot.slane %v172_v24, 3 }
  0x16   : > { %611 = vmatmul.mubr.msk.f32.vlgmr.msra.gmra.mrb[0].mxu0 %vm184_vm1, %v183_v26  ;;  %667 = vmatprep.subr.bf16.mxu1 %v690_v3  ;;  %v420_v35 = vsel %vm417_vm2, %v418_v30, %v419_v31 }
  0x17   : > { %660 = vmatpush3.bf16.msra.mxu0 %v659_v25  ;;  %632 = vmatprep.mubr.msk.f32.mxu0 %vm691_vm0, %v692_v11  ;;  %v338_v36 = vsel %vm335_vm3, %v336_v33, %v337_v34 }
  0x18   : > { %661 = vmatprep.subr.bf16.mxu0 %v690_v3 }
  0x19   : > { %669 = vmatpush3.bf16.msra.mxu1 %v668_v29 }
  0x1b   : > { %663 = vmatpush3.bf16.msra.mxu0 %v662_v32 }
  0x1c   : > { %644 = vmatmul.mubr.msk.f32.vlgmr.msra.gmra.mrb[2].mxu1 %vm184_vm1, %v420_v35 }
  0x1e   : > { %633 = vmatmul.mubr.msk.f32.vlgmr.msra.gmra.mrb[2].mxu0 %vm184_vm1, %v338_v36 }
  0xe7   : > { %v325_v37 = vpop.f32.mrb[0].mxu1 }
  0xe8   : > { %v623_v38 = vpop.f32.mrb[1].mxu1 }
  0xe9   : > { %v253_v39 = vpop.f32.mrb[0].mxu0 }
  0xea   : > { %v326_v40 = vadd.f32 %v325_v37, %v253_v39  ;;  %v612_v41 = vpop.f32.mrb[1].mxu0 }
  0xef   : > { %v489_v42 = vpop.f32.mrb[2].mxu1 }
  0xf0   : > { %v645_v43 = vpop.f32.mrb[3].mxu1 }
  0xf1   : > { %v407_v44 = vpop.f32.mrb[2].mxu0 }
  0xf2   : > { %v411_v45 = vadd.f32 %v407_v44, %v326_v40  ;;  %v634_v46 = vpop.f32.mrb[3].mxu0 }
  0xf4   : > { %v493_v48 = vadd.f32 %v489_v42, %v411_v45 }
  0xf6   : > { %v501_v49 = vadd.f32 %v579_v47, %v493_v48 }
  0xf8   : > { %502 = vst [vmem:[%s168_s30] sm:$0x3f] %v501_v49 }
  0xf9 PF: > { %s13_s12 = sadd.s32 1, %s688_s12  }
  0xfa   : > { %p10_p4 = scmp.ge.s32.totalorder %s13_s12, 4  }
  0xfc   :  { %12 = sbr.rel (!%p10_p4) target bundleno = 1 (0x1), region = 65 }

</bundles_post_ra>
